<compile_context>
chip_gen: v6e
topology: v6e:2x2x1
jax: 0.10.0
libtpu: 0.0.40
codegen_flags: <defaults>
</compile_context>

<pallas_src>
import functools

import jax
import jax.numpy as jnp
from jax import lax
from jax.experimental import pallas as pl
from jax.experimental.pallas import tpu as pltpu

LN_EPS = 1e-5


def _round_up(a: int, b: int) -> int:
    return ((a + b - 1) // b) * b


def _vmem_capacity_bytes() -> int:
    """Per-core VMEM capacity; conservative fallback if the query is unavailable."""
    try:
        info = pltpu.get_tpu_info()
        cap = int(getattr(info, "vmem_capacity_bytes", 0))
        if cap > 0:
            return cap
    except Exception:
        pass
    return 64 * 1024 * 1024  # v7x per-TC value; safe lower bound for v5e/v6e (128 MiB)


def _patch_embed_kernel(x_ref, w_ref, p_ref, o_ref):
    # x_ref: (TM, K)  flattened patches (f32 or bf16)
    # w_ref: (K,  F)  conv weight as matmul weight (VMEM-resident)
    # p_ref: (3,  F)  packed [conv bias; ln gamma; ln beta], f32 (VMEM-resident)
    # o_ref: (TM, F)
    params = p_ref[...]
    bias = params[0:1, :]
    gamma = params[1:2, :]
    beta = params[2:3, :]

    y = jnp.dot(x_ref[...], w_ref[...], preferred_element_type=jnp.float32)
    y = y + bias

    f_true = y.shape[-1]
    inv_f = jnp.float32(1.0 / f_true)
    # Two-pass LayerNorm on the in-VMEM tile (numerically matches torch.nn.LayerNorm).
    mean = jnp.sum(y, axis=-1, keepdims=True) * inv_f
    d = y - mean
    var = jnp.sum(d * d, axis=-1, keepdims=True) * inv_f
    out = d * lax.rsqrt(var + LN_EPS) * gamma + beta
    o_ref[...] = out.astype(o_ref.dtype)


@functools.partial(jax.jit,
                   static_argnames=("patch_size", "compute_dtype", "out_dtype", "tm"))
def patch_embed(x, conv_w, conv_b, ln_gamma, ln_beta, *, patch_size,
                compute_dtype=None, out_dtype=None, tm=4096):
    """x: (N, 1, H, W) -> (N, L, F), matching PatchEmbed.forward."""
    N, C, H, W = x.shape
    assert C == 1 and H % patch_size == 0 and W % patch_size == 0
    F = conv_w.shape[0]
    K = patch_size * patch_size
    Hs, Ws = H // patch_size, W // patch_size
    L = Hs * Ws
    M = N * L

    in_dtype = jnp.dtype(compute_dtype) if compute_dtype is not None else jnp.dtype(x.dtype)
    o_dtype = jnp.dtype(out_dtype) if out_dtype is not None else jnp.dtype(x.dtype)
    sublane = 16 if (in_dtype.itemsize == 2 or o_dtype.itemsize == 2) else 8

    # Lane-rounded dims for VMEM-footprint estimation (VMEM tiles pad lanes to 128).
    K_l = _round_up(K, 128)
    F_l = _round_up(F, 128)

    cap = _vmem_capacity_bytes()
    budget = int(cap * 0.70)  # ~45 MiB on v7x (64 MiB/TC), ~90 MiB on v5e/v6e (128 MiB)

    def vmem_est(tm_):
        return (2 * tm_ * K_l * in_dtype.itemsize      # double-buffered LHS tiles
                + 2 * tm_ * F_l * o_dtype.itemsize     # double-buffered output tiles
                + 2 * K_l * F_l * in_dtype.itemsize    # resident weight (2 pipeline bufs)
                + 2 * 8 * F_l * 4                      # packed bias/gamma/beta rows
                + 2 * tm_ * F_l * 4)                   # f32 LayerNorm temporaries

    # ---- M-tile sizing: VMEM-aware, grid >= 2 steps (v7x megacore), prefer TM | M ------
    TM = max(sublane, _round_up(min(tm, M), sublane))
    while TM > sublane and vmem_est(TM) > budget:
        TM = max(sublane, _round_up(TM // 2, sublane))
    if M >= 2 * sublane:  # keep both v7x TensorCores busy
        TM = min(TM, max(sublane, (M // 2 // sublane) * sublane))

    # Prefer a TM that divides M so no input padding / post-kernel slice pass is needed.
    best_div = 0
    i = 1
    while i * i <= M:
        if M % i == 0:
            for d in (i, M // i):
                if d % sublane == 0 and d <= TM and d > best_div:
                    best_div = d
        i += 1
    if best_div > 0:
        TM = best_div
        M_pad = M
    else:
        M_pad = _round_up(M, TM)

    vmem_limit = max(32 * 1024 * 1024,
                     min(int(cap * 0.9), vmem_est(TM) + 16 * 1024 * 1024))

    # ---- glue: cast-then-swizzle so the materialized patch matrix is already narrow ----
    x_c = x.astype(in_dtype) if in_dtype != x.dtype else x
    patches = x_c.reshape(N, Hs, patch_size, Ws, patch_size)
    patches = patches.transpose(0, 1, 3, 2, 4).reshape(M, K)
    if M_pad != M:
        patches = jnp.pad(patches, ((0, M_pad - M), (0, 0)))

    w_mat = conv_w.reshape(F, K).T                         # (K, F), conv flatten order
    if w_mat.dtype != in_dtype:
        w_mat = w_mat.astype(in_dtype)
    params = jnp.stack([conv_b.astype(jnp.float32),
                        ln_gamma.astype(jnp.float32),
                        ln_beta.astype(jnp.float32)], axis=0)  # (3, F)

    out = pl.pallas_call(
        _patch_embed_kernel,
        out_shape=jax.ShapeDtypeStruct((M_pad, F), o_dtype),
        grid_spec=pltpu.PrefetchScalarGridSpec(
            num_scalar_prefetch=0,
            grid=(M_pad // TM,),
            in_specs=[
                pl.BlockSpec((TM, K), lambda i: (i, 0)),
                pl.BlockSpec((K, F), lambda i: (0, 0)),    # weight stays VMEM-resident
                pl.BlockSpec((3, F), lambda i: (0, 0)),    # bias/gamma/beta resident
            ],
            out_specs=pl.BlockSpec((TM, F), lambda i: (i, 0)),
        ),
        compiler_params=pltpu.CompilerParams(
            dimension_semantics=("parallel",),
            vmem_limit_bytes=vmem_limit,
        ),
    )(patches, w_mat, params)

    if M_pad != M:
        out = out[:M]
    return out.reshape(N, L, F)


def _reference(x, conv_w, conv_b, ln_gamma, ln_beta, patch_size):
    # Pure-JAX reference (mirrors the PyTorch module).
    y = lax.conv_general_dilated(
        x, conv_w,
        window_strides=(patch_size, patch_size),
        padding="VALID",
        dimension_numbers=("NCHW", "OIHW", "NCHW"),
    ) + conv_b.reshape(1, -1, 1, 1)
    N, F = y.shape[0], y.shape[1]
    y = y.reshape(N, F, -1).transpose(0, 2, 1)             # (N, L, F)
    mean = jnp.mean(y, axis=-1, keepdims=True)
    var = jnp.mean((y - mean) ** 2, axis=-1, keepdims=True)
    return (y - mean) / jnp.sqrt(var + LN_EPS) * ln_gamma + ln_beta


if __name__ == "__main__":
    key = jax.random.PRNGKey(0)
    k_x, k_w, k_b, k_g, k_beta = jax.random.split(key, 5)

    # Small shapes: batch=2, in_channels=1 (fixed by the module), spatial=16,
    # patch_size=4 -> L=16 patches, num_features=32.
    N, H, W = 2, 16, 16
    patch_size = 4
    num_features = 32

    x = jax.random.normal(k_x, (N, 1, H, W), dtype=jnp.float32)
    conv_w = jax.random.normal(
        k_w, (num_features, 1, patch_size, patch_size), dtype=jnp.float32) * 0.1
    conv_b = jax.random.normal(k_b, (num_features,), dtype=jnp.float32) * 0.1
    ln_gamma = 1.0 + 0.05 * jax.random.normal(k_g, (num_features,), dtype=jnp.float32)
    ln_beta = 0.05 * jax.random.normal(k_beta, (num_features,), dtype=jnp.float32)

    ref = _reference(x, conv_w, conv_b, ln_gamma, ln_beta, patch_size)
    L = (H // patch_size) * (W // patch_size)

    # f32 path (exact module semantics).
    out = patch_embed(x, conv_w, conv_b, ln_gamma, ln_beta, patch_size=patch_size)
    out = jax.block_until_ready(out)
    assert out.shape == ref.shape == (N, L, num_features)
    assert jnp.max(jnp.abs(out - ref)) < 1e-3

    # bf16 streamed operands + bf16 output (halves HBM traffic; looser tolerance).
    out_bf16 = patch_embed(x, conv_w, conv_b, ln_gamma, ln_beta,
                           patch_size=patch_size,
                           compute_dtype=jnp.bfloat16, out_dtype=jnp.bfloat16)
    out_bf16 = jax.block_until_ready(out_bf16)
    assert out_bf16.shape == ref.shape and out_bf16.dtype == jnp.bfloat16
    assert jnp.max(jnp.abs(out_bf16.astype(jnp.float32) - ref)) < 7.5e-2

    print("KERNEL_OK")
</pallas_src>

<mosaic_0001>
module attributes {stable_mosaic.version = 11 : i64} {
  func.func @_patch_embed_kernel(%arg0: i32, %arg1: memref<16x16xf32, #tpu.memory_space<vmem>>, %arg2: memref<16x32xf32, #tpu.memory_space<vmem>>, %arg3: memref<3x32xf32, #tpu.memory_space<vmem>>, %arg4: memref<16x32xf32, #tpu.memory_space<vmem>>) attributes {dimension_semantics = [#tpu.dimension_semantics<parallel>], iteration_bounds = array<i64: 2>, scalar_prefetch = 0 : i64, scratch_operands = 0 : i64, tpu.core_type = #tpu.core_type<tc>, window_params = [{transform_indices = @transform_0, window_bounds = array<i64: 16, 16>}, {pipeline_mode = #tpu.pipeline_mode<synchronous>, transform_indices = @transform_1, window_bounds = array<i64: 16, 32>}, {pipeline_mode = #tpu.pipeline_mode<synchronous>, transform_indices = @transform_2, window_bounds = array<i64: 3, 32>}, {transform_indices = @transform_3, window_bounds = array<i64: 16, 32>}]} {
    %c0 = arith.constant 0 : index
    %c0_0 = arith.constant 0 : index
    %0 = vector.load %arg3[%c0, %c0_0] : memref<3x32xf32, #tpu.memory_space<vmem>>, vector<3x32xf32>
    %1 = vector.extract_strided_slice %0 {offsets = [0, 0], sizes = [1, 32], strides = [1, 1]} : vector<3x32xf32> to vector<1x32xf32>
    %2 = vector.extract_strided_slice %0 {offsets = [1, 0], sizes = [1, 32], strides = [1, 1]} : vector<3x32xf32> to vector<1x32xf32>
    %3 = vector.extract_strided_slice %0 {offsets = [2, 0], sizes = [1, 32], strides = [1, 1]} : vector<3x32xf32> to vector<1x32xf32>
    %c0_1 = arith.constant 0 : index
    %c0_2 = arith.constant 0 : index
    %4 = vector.load %arg1[%c0_1, %c0_2] : memref<16x16xf32, #tpu.memory_space<vmem>>, vector<16x16xf32>
    %c0_3 = arith.constant 0 : index
    %c0_4 = arith.constant 0 : index
    %5 = vector.load %arg2[%c0_3, %c0_4] : memref<16x32xf32, #tpu.memory_space<vmem>>, vector<16x32xf32>
    %cst = arith.constant dense<0.000000e+00> : vector<16x32xf32>
    %6 = tpu.matmul %4, %5, %cst {dimension_numbers = #tpu.dot_dimension_numbers<[1], [0], [0], [1], [0, 0, 1, 1], [], []>} : vector<16x16xf32>, vector<16x32xf32>, vector<16x32xf32> -> vector<16x32xf32>
    %7 = vector.broadcast %1 : vector<1x32xf32> to vector<16x32xf32>
    %8 = arith.addf %6, %7 : vector<16x32xf32>
    %cst_5 = arith.constant dense<0.000000e+00> : vector<16xf32>
    %9 = vector.multi_reduction <add>, %8, %cst_5 [1] : vector<16x32xf32> to vector<16xf32>
    %10 = vector.shape_cast %9 : vector<16xf32> to vector<16x1xf32>
    %cst_6 = arith.constant 3.125000e-02 : f32
    %11 = vector.broadcast %cst_6 : f32 to vector<16x1xf32>
    %12 = arith.mulf %10, %11 : vector<16x1xf32>
    %13 = vector.broadcast %12 : vector<16x1xf32> to vector<16x32xf32>
    %14 = arith.subf %8, %13 : vector<16x32xf32>
    %15 = arith.mulf %14, %14 : vector<16x32xf32>
    %cst_7 = arith.constant dense<0.000000e+00> : vector<16xf32>
    %16 = vector.multi_reduction <add>, %15, %cst_7 [1] : vector<16x32xf32> to vector<16xf32>
    %17 = vector.shape_cast %16 : vector<16xf32> to vector<16x1xf32>
    %cst_8 = arith.constant 3.125000e-02 : f32
    %18 = vector.broadcast %cst_8 : f32 to vector<16x1xf32>
    %19 = arith.mulf %17, %18 : vector<16x1xf32>
    %cst_9 = arith.constant 9.99999974E-6 : f32
    %20 = vector.broadcast %cst_9 : f32 to vector<16x1xf32>
    %21 = arith.addf %19, %20 : vector<16x1xf32>
    %22 = math.rsqrt %21 : vector<16x1xf32>
    %23 = vector.broadcast %22 : vector<16x1xf32> to vector<16x32xf32>
    %24 = arith.mulf %14, %23 : vector<16x32xf32>
    %25 = vector.broadcast %2 : vector<1x32xf32> to vector<16x32xf32>
    %26 = arith.mulf %24, %25 : vector<16x32xf32>
    %27 = vector.broadcast %3 : vector<1x32xf32> to vector<16x32xf32>
    %28 = arith.addf %26, %27 : vector<16x32xf32>
    %c0_10 = arith.constant 0 : index
    %c0_11 = arith.constant 0 : index
    %29 = vector.load %arg4[%c0_10, %c0_11] : memref<16x32xf32, #tpu.memory_space<vmem>>, vector<16x32xf32>
    tpu.vector_store %arg4[%c0_10, %c0_11], %28 {strides = array<i32>} : memref<16x32xf32, #tpu.memory_space<vmem>>, vector<16x32xf32>,
    return
  }
  func.func @transform_0(%arg0: i32) -> (i32, i32) {
    %c0_i32 = arith.constant 0 : i32
    %c0_i32_0 = arith.constant 0 : i32
    return %arg0, %c0_i32 : i32, i32
  }
  func.func @transform_1(%arg0: i32) -> (i32, i32) {
    %c0_i32 = arith.constant 0 : i32
    %c0_i32_0 = arith.constant 0 : i32
    %c0_i32_1 = arith.constant 0 : i32
    return %c0_i32, %c0_i32_0 : i32, i32
  }
  func.func @transform_2(%arg0: i32) -> (i32, i32) {
    %c0_i32 = arith.constant 0 : i32
    %c0_i32_0 = arith.constant 0 : i32
    %c0_i32_1 = arith.constant 0 : i32
    return %c0_i32, %c0_i32_0 : i32, i32
  }
  func.func @transform_3(%arg0: i32) -> (i32, i32) {
    %c0_i32 = arith.constant 0 : i32
    %c0_i32_0 = arith.constant 0 : i32
    return %arg0, %c0_i32 : i32, i32
  }
}

</mosaic_0001>

<bundles_post_ra>
// kernel: patch_embed.1
= control target key start
LH: loop header
LB: loop body
LE: loop exit
PB: predicated region body
PF: predicated region fallthrough
CT: control target
= control target key end

     0   :  { %8 = vsyncpa [#allocation3], 0  ;;  %s652_s0 = inlined_call_operand.vmem [shape: f32[32,16], index: 0, kind: input, shape index: {}]   ;;  %s653_s1 = inlined_call_operand.vmem [shape: f32[16,32], index: 1, kind: input, shape index: {}]   ;;  %s654_s2 = inlined_call_operand.vmem [shape: f32[3,32], index: 2, kind: input, shape index: {}]   ;;  %s655_s3 = inlined_call_operand.hbm [shape: f32[32,32], index: 3, kind: output, shape index: {}]  }
   0x1   :  { %10 = vsyncpa [#allocation3 + $0x1], 0  ;;  %s536_s12 = smov 0   ;;  %s538_s13 = smov 0  }
   0x2   :  { %s540_s14 = smov 0   ;;  %s542_s15 = smov 0  }
   0x3 LB: > { %s557_s16 = sadd.s32 4294967295, %s511_s15   ;;  %s380_s17 = sadd.s32 4294967294, %s511_s15   ;;  %s511_s15 = sphi %s542_s15, %s661_s15   ;;  %s507_s14 = sphi %s540_s14, %s660_s14   ;;  %s503_s13 = sphi %s538_s13, %s659_s13   ;;  %s499_s12 = sphi %s536_s12, %s658_s12  }
   0x4   : > { %s561_s18 = sadd.s32 1, %s511_s15   ;;  %s91_s19 = sadd.s32 1, %s507_s14 }
   0x5   : > { %s88_s20 = ssub.s32 %s511_s15, %s561_s18  ;;  %p101_p0 = scmp.ne.s32.totalorder %s507_s14, %s503_s13 }
   0x6   : > { %p89_p1 = scmp.eq.s32.totalorder %s88_s20, 0  ;;  %p102_p2 = scmp.eq.s32.totalorder %s557_s16, 1 }
   0x7   : > { %p107_p3 = scmp.ne.s32.totalorder %s503_s13, %s499_s12  ;;  %p108_p4 = scmp.eq.s32.totalorder %s380_s17, 1 }
   0x8   : > { %s572_s21 = scalar_select %p89_p1, %s507_s14, %s91_s19  }
   0x9   : > { %p574_p5 = por %p102_p2, %p101_p0  ;;  %p578_p6 = por %p108_p4, %p107_p3 }
   0xa   : > { %p383_p7 = scmp.ge.s32.totalorder %s511_s15, 1  ;;  %p141_p8 = scmp.lt.s32.totalorder %s511_s15, 3 }
   0xc   : > { %p142_p9 = pnand %p383_p7, %p141_p8 }
   0xd   : > { %s385_s28 = sshll.u32 (!%p142_p9), %s557_s16, 1  ;;  %s162_s8 = sand.u32 (!%p142_p9), 1, %s503_s13  }
   0xe   : > { %145 = sbr.rel (%p142_p9) target bundleno = 547 (0x223), region = 32  ;;  %p166_p10 = scmp.lt.s32.totalorder (!%p142_p9), %s385_s28, 3 }
   0xf   : > { %s384_s9 = sshll.u32 (!%p142_p9), %s162_s8, 4  ;;  %s394_s10 = sshll.u32 (!%p142_p9), %s557_s16, 8 }
  0x10   : > { %s164_s11 = scalar_lea.vmem (!%p142_p9), [#allocation2], %s384_s9  ;;  %s607_s24 = scalar_lea.hbm (!%p142_p9), %s655_s3, %s394_s10 }
  0x11   : > { %s318_s17 = sshll.u32 (!%p142_p9), %s164_s11, 4  ;;  %s612_s25 = scalar_lea.sflag (!%p142_p9), [#allocation3], %s162_s8  ;;  %s609_s17 = int_to_ptr.vmem [resolvable:$true] %s318_s17 }
  0x12   : > { %s451_s16 = scalar_lea.vmem (!%p142_p9), %s609_s17, 256  ;;  %s513_s26 = smov (!%p142_p9), [#allocation2]  }
  0x13   : > { %v176_v0 = vld [vmem:[%s653_s1 + $0x8] sm:$0xff]  ;;  %v175_v1 = vld [vmem:[%s653_s1] sm:$0xff]  ;;  %s663_s28 = smov (!%p166_p10, %s385_s28), 3  ;;  %vm181_vm0 = vcmask 130048   ;;  %v177_v4 = vlaneseq  ;;  %vm263_vm1 = vcmask 261120   ;;  %p452_p11 = scmp.ne.s32.totalorder %s609_s17, %s451_s16 }
  0x14   : > { %399 = vmatprep.subr.mxu0 %v176_v0  ;;  %s386_s29 = sshll.u32 %s663_s28, 3  ;;  %v172_v7 = vld [vmem:[%s654_s2] sm:$0x7]  ;;  %s455_s27 = sshll.u32 %s513_s26, 4  ;;  %s456_s27 = int_to_ptr.vmem [resolvable:$false] %s455_s27 }
  0x15   : > { %400 = vmatpush3.msra.mxu0 %v176_v0  ;;  %s169_s5 = scalar_lea.vmem %s652_s0, %s386_s29  ;;  %v178_v5 = vshrl.u32 %v177_v4, 7  ;;  %p453_p12 = pnand %p452_p11, %p574_p5 }
  0x16   : > { %401 = vmatprep.subr.mxu0 %v175_v1  ;;  %v173_v2 = vld [vmem:[%s169_s5] sm:$0xff]  ;;  %v174_v3 = vld [vmem:[%s169_s5 + $0x8] sm:$0xff]  ;;  %s457_s28 = scalar_lea.vmem %s456_s27, 512  ;;  %p458_p0 = scmp.lt.s32.totalorder %s609_s17, %s456_s27 }
  0x17   : > { %402 = vmatpush3.msra.mxu0 %v175_v1  ;;  %403 = vmatprep.mubr.msk.f32.mxu0 %vm181_vm0, %v173_v2  ;;  %v179_v6 = vsub.s32 0, %v178_v5  ;;  %v292_v31 = vsub.s32 1, %v178_v5  ;;  %v298_v32 = vsub.s32 2, %v178_v5  ;;  %p454_p13 = pneg %p453_p12  ;;  %p459_p1 = scmp.lt.s32.totalorder %s457_s28, %s451_s16 }
  0x18   : > { %404 = vmatmul.mubr.msk.f32.vlgmr.msra.gmra.mxu0 %vm181_vm0, %v174_v3 }
  0x19   : > { %v180_v9 = vrot.slane %v172_v7, %v179_v6  ;;  %v293_v33 = vrot.slane %v172_v7, %v292_v31  ;;  %v299_v35 = vrot.slane %v172_v7, %v298_v32  ;;  %p460_p2 = por %p459_p1, %p458_p0 }
  0x1b   : > { %p461_p3 = pnand %p460_p2, %p454_p13 }
  0xd8   : > { %v405_v8 = vpop.f32.mrf.mxu0 }
  0xd9   : > { %v260_v12 = vadd.f32 %v405_v8, %v180_v9 }
  0xda   : > { %v254_v10 = vpop.f32.mrf.mxu0 }
  0xdb   : > { %v255_v11 = vadd.f32 %v254_v10, %v180_v9  ;;  %v267_v14 = vsel %vm263_vm1, %v260_v12, 0.0 }
  0xdd   : > { %v264_v13 = vsel %vm263_vm1, %v255_v11, 0.0 }
  0xde   : > { %265 = vadd.xlane.f32.xlu0 %v264_v13 }
  0xe2   : > { %268 = vadd.xlane.f32.xlu0 %v267_v14 }
 0x167   : > { %v266_v15 = vpop.xlane.xlu0 %265 }
 0x168   : > { %v270_v16 = vmul.f32 0.03125, %v266_v15 }
 0x16a   : > { %v272_v17 = vsub.f32 %v255_v11, %v270_v16 }
 0x16b   : > { %v269_v18 = vpop.xlane.xlu0 %268 }
 0x16c   : > { %v271_v19 = vmul.f32 0.03125, %v269_v18  ;;  %v274_v20 = vmul.f32 %v272_v17, %v272_v17 }
 0x16e   : > { %v273_v21 = vsub.f32 %v260_v12, %v271_v19  ;;  %v276_v22 = vsel %vm263_vm1, %v274_v20, 0.0 }
 0x16f   : > { %277 = vadd.xlane.f32.xlu1 %v276_v22 }
 0x170   : > { %v275_v23 = vmul.f32 %v273_v21, %v273_v21 }
 0x172   : > { %v279_v24 = vsel %vm263_vm1, %v275_v23, 0.0 }
 0x173   : > { %280 = vadd.xlane.f32.xlu1 %v279_v24 }
 0x1f8   : > { %v278_v25 = vpop.xlane.xlu1 %277 }
 0x1f9   : > { %v282_v26 = vmul.f32 0.03125, %v278_v25 }
 0x1fb   : > { %v284_v27 = vadd.f32 1e-05, %v282_v26 }
 0x1fc   : > { %v281_v28 = vpop.xlane.xlu1 %280 }
 0x1fd   : > { %447 = vrsqrt.f32 %v284_v27  ;;  %v283_v29 = vmul.f32 0.03125, %v281_v28 }
 0x1ff   : > { %v285_v30 = vadd.f32 1e-05, %v283_v29 }
 0x201   : > { %449 = vrsqrt.f32 %v285_v30 }
 0x20a   : > { %v448_v34 = vpop.eup %447 }
 0x20b   : > { %v288_v36 = vmul.f32 %v448_v34, %v272_v17 }
 0x20d   : > { %v294_v37 = vmul.f32 %v293_v33, %v288_v36 }
 0x20e   : > { %v450_v38 = vpop.eup %449 }
 0x20f   : > { %v289_v39 = vmul.f32 %v450_v38, %v273_v21  ;;  %v300_v40 = vadd.f32 %v299_v35, %v294_v37 }
 0x211   : > { %v295_v41 = vmul.f32 %v293_v33, %v289_v39  ;;  %302 = vst.msk [vmem:[%s164_s11] sm:$0xff] %vm263_vm1, %v300_v40 }
 0x213   : > { %v301_v42 = vadd.f32 %v299_v35, %v295_v41 }
 0x215   : > { %303 = vst.msk [vmem:[%s164_s11 + $0x8] sm:$0xff] %vm263_vm1, %v301_v42 }
 0x216   : > { %464 = shalt.err (!%p461_p3)
}
 0x217   : > { %s465_s29 = scalar_lea.hbm %s607_s24, 256  ;;  %s469_s5 = scalar_lea.hbm %s655_s3, 512 }
 0x218   : > { %p466_p4 = scmp.ne.s32.totalorder %s607_s24, %s465_s29  ;;  %p470_p9 = scmp.lt.s32.totalorder %s607_s24, %s655_s3 }
 0x219   : > { %p471_p10 = scmp.lt.s32.totalorder %s469_s5, %s465_s29 }
 0x21a   : > { %p467_p7 = pnand %p466_p4, %p574_p5 }
 0x21b   : > { %p472_p11 = por %p471_p10, %p470_p9 }
 0x21c   : > { %p468_p8 = pneg %p467_p7 }
 0x21e   : > { %p473_p12 = pnand %p472_p11, %p468_p8 }
 0x220   : > { %476 = shalt.err (!%p473_p12)
}
 0x221   : > { %s514_s8 = smov 128   ;;  %s515_s9 = smov 8  }
 0x222   : > { %406 = dma.vmem_to_hbm [thread:$0]  (%p574_p5), %s609_s17, 256, %s607_s24, %s612_s25, %s514_s8, %s514_s8, %s515_s9  }
 0x223 PF: > { %p412_p13 = scmp.ge.s32.totalorder %s511_s15, 2  ;;  %s333_s10 = sand.u32 1, %s499_s12  }
 0x224   : > { %s334_s11 = scalar_lea.sflag [#allocation3], %s333_s10 }
 0x225   : > { %p409_p0 = pnand %p412_p13, %p578_p6 }
 0x227   : > { %p410_p1 = pneg %p409_p0 }
 0x229   : > { %494 = dma.done.wait (%p410_p1), %s334_s11, 256  }
 0x22a   : > { %496 = vsyncadd (%p410_p1), %s334_s11, 4294967040  ;;  %p13_p2 = scmp.ge.s32.totalorder %s561_s18, 4   ;;  %s658_s12 = smov %s503_s13 }
 0x22b   : > { %s659_s13 = smov %s507_s14  ;;  %s660_s14 = smov %s572_s21 }
 0x22c   : > { %s661_s15 = smov %s561_s18  ;;  %15 = sbr.rel (!%p13_p2) target bundleno = 3 (0x3), region = 67 }
 0x231   :  { %339 = vsyncpa [#allocation3], 1 }
 0x232   :  { %341 = vsyncpa [#allocation3 + $0x1], 1 }

</bundles_post_ra>
